<compile_context>
chip_gen: v6e
topology: v6e:2x2x1
jax: 0.10.0
libtpu: 0.0.40
codegen_flags: <defaults>
</compile_context>

<pallas_src>
import functools

import jax
import jax.numpy as jnp
from jax.experimental import pallas as pl
from jax.experimental.pallas import tpu as pltpu


def _round_up(n: int, m: int) -> int:
    return ((n + m - 1) // m) * m


def _bow_classifier_kernel(x_ref, w_ref, b_ref, o_ref):
    # x_ref: (tm, tk) bf16   w_ref: (tk, Lp) bf16
    # b_ref: (1, Lp) f32     o_ref: (tm, Lp) f32  (resident accumulator)
    k = pl.program_id(1)

    @pl.when(k == 0)
    def _init():
        o_ref[...] = jnp.zeros_like(o_ref)

    o_ref[...] += jnp.dot(
        x_ref[...], w_ref[...], preferred_element_type=jnp.float32
    )

    @pl.when(k == pl.num_programs(1) - 1)
    def _finalize():
        logits = o_ref[...] + b_ref[...]            # broadcast (1, Lp) -> (tm, Lp)
        o_ref[...] = jax.nn.sigmoid(logits)


def prepare_params(weight, bias, *, compute_dtype=jnp.bfloat16):
    """One-time parameter prep (hoisted out of the hot path).

    weight: [num_labels, vocab_length] (torch nn.Linear layout), bias: [num_labels].
    Returns (wT_padded [V, Lp] compute_dtype, bias_padded [1, Lp] f32, num_labels).
    """
    L, V = weight.shape
    Lp = _round_up(L, 128)                          # lane-dense label axis
    wT = jnp.zeros((V, Lp), dtype=compute_dtype)
    wT = wT.at[:, :L].set(weight.T.astype(compute_dtype))
    b = jnp.zeros((1, Lp), dtype=jnp.float32)
    b = b.at[0, :L].set(bias.astype(jnp.float32))
    return wT, b, L


@functools.partial(jax.jit, static_argnames=("num_labels",))
def bow_classifier(x, wT_padded, bias_padded, *, num_labels):
    """x: [B, V]; wT_padded: [V, Lp]; bias_padded: [1, Lp] -> [B, num_labels] f32."""
    B, V = x.shape
    Vw, Lp = wT_padded.shape
    assert Vw == V

    compute_dtype = wT_padded.dtype

    # --- tile sizes -------------------------------------------------------
    # Batch tile: multiple of 8, capped at 256 (MXU height on v6e/v7x).
    tm = min(256, _round_up(B, 8))
    B_pad = _round_up(B, tm)
    # Vocab (reduction) tile: multiple of 128, capped at 4096.
    # Double-buffered VMEM (bf16): 2*(tm*tk + tk*Lp)*2B + out f32
    # ≈ 6.3 MiB at tm=256, tk=4096, Lp=128 -> far under the 32 MiB scoped
    # default and v7x's 64 MiB physical.
    tk = min(4096, _round_up(V, 128))
    V_pad = _round_up(V, tk)

    # --- pad activations / weight along padded axes (zeros are exact) -----
    xp = x.astype(compute_dtype)
    if B_pad != B or V_pad != V:
        xp = jnp.zeros((B_pad, V_pad), dtype=compute_dtype).at[:B, :V].set(xp)
    wp = wT_padded
    if V_pad != V:
        wp = jnp.zeros((V_pad, Lp), dtype=compute_dtype).at[:V, :].set(wp)

    grid = (B_pad // tm, V_pad // tk)               # reduction axis last

    cost = pl.CostEstimate(
        flops=2 * B_pad * V_pad * Lp,
        transcendentals=B_pad * Lp,
        bytes_accessed=(
            B_pad * V_pad * xp.dtype.itemsize
            + V_pad * Lp * wp.dtype.itemsize
            + B_pad * Lp * 4
        ),
    )

    out = pl.pallas_call(
        _bow_classifier_kernel,
        out_shape=jax.ShapeDtypeStruct((B_pad, Lp), jnp.float32),
        grid_spec=pltpu.PrefetchScalarGridSpec(
            num_scalar_prefetch=0,
            grid=grid,
            in_specs=[
                pl.BlockSpec((tm, tk), lambda i, k: (i, k)),   # x tile
                pl.BlockSpec((tk, Lp), lambda i, k: (k, 0)),   # weight tile
                pl.BlockSpec((1, Lp), lambda i, k: (0, 0)),    # bias (resident)
            ],
            out_specs=pl.BlockSpec((tm, Lp), lambda i, k: (i, 0)),  # accumulator
        ),
        compiler_params=pltpu.CompilerParams(
            dimension_semantics=("parallel", "arbitrary"),
        ),
        cost_estimate=cost,
    )(xp, wp, bias_padded)

    return out[:B, :num_labels]


if __name__ == "__main__":
    # Small, module-consistent shapes: batch=8, vocab_length=128, num_labels=4
    batch, vocab_length, num_labels = 8, 128, 4

    key = jax.random.PRNGKey(0)
    kx, kw, kb = jax.random.split(key, 3)

    # Deterministic synthetic parameters (same shapes as nn.Linear(vocab, labels))
    bound = 1.0 / jnp.sqrt(vocab_length)
    weight = jax.random.uniform(kw, (num_labels, vocab_length),
                                minval=-bound, maxval=bound, dtype=jnp.float32)
    bias = jax.random.uniform(kb, (num_labels,),
                              minval=-bound, maxval=bound, dtype=jnp.float32)

    # Bag-of-words style input (non-negative counts)
    x = jax.random.uniform(kx, (batch, vocab_length), dtype=jnp.float32)

    # One-time parameter prep (transpose / pad / bf16 cast hoisted out of hot path)
    wT_p, bias_p, L = prepare_params(weight, bias, compute_dtype=jnp.bfloat16)

    out = bow_classifier(x, wT_p, bias_p, num_labels=L)
    out = jax.block_until_ready(out)

    # Correctness check vs. plain-JAX f32 reference (bf16 MXU inputs -> looser tol)
    ref = jax.nn.sigmoid(x @ weight.T + bias)
    assert out.shape == (batch, num_labels)
    assert jnp.allclose(out, ref, atol=2e-2, rtol=0), float(jnp.max(jnp.abs(out - ref)))

    print("KERNEL_OK")
</pallas_src>

<mosaic_0001>
module attributes {stable_mosaic.version = 11 : i64} {
  func.func @_bow_classifier_kernel(%arg0: i32, %arg1: i32, %arg2: memref<8x128xbf16, #tpu.memory_space<vmem>>, %arg3: memref<128x128xbf16, #tpu.memory_space<vmem>>, %arg4: memref<1x128xf32, #tpu.memory_space<vmem>>, %arg5: memref<8x128xf32, #tpu.memory_space<vmem>>) attributes {dimension_semantics = [#tpu.dimension_semantics<parallel>, #tpu.dimension_semantics<arbitrary>], iteration_bounds = array<i64: 1, 1>, scalar_prefetch = 0 : i64, scratch_operands = 0 : i64, tpu.core_type = #tpu.core_type<tc>, window_params = [{transform_indices = @transform_0, window_bounds = array<i64: 8, 128>}, {transform_indices = @transform_1, window_bounds = array<i64: 128, 128>}, {pipeline_mode = #tpu.pipeline_mode<synchronous>, transform_indices = @transform_2, window_bounds = array<i64: 1, 128>}, {transform_indices = @transform_3, window_bounds = array<i64: 8, 128>}]} {
    %c0_i32 = arith.constant 0 : i32
    %0 = arith.cmpi eq, %arg1, %c0_i32 : i32
    %1 = arith.extui %0 : i1 to i32
    %c0_i32_0 = arith.constant 0 : i32
    %2 = arith.cmpi ne, %1, %c0_i32_0 : i32
    scf.if %2 {
      %cst_10 = arith.constant 0.000000e+00 : f32
      %12 = vector.broadcast %cst_10 : f32 to vector<8x128xf32>
      %c0_11 = arith.constant 0 : index
      %c0_12 = arith.constant 0 : index
      %13 = vector.load %arg5[%c0_11, %c0_12] : memref<8x128xf32, #tpu.memory_space<vmem>>, vector<8x128xf32>
      tpu.vector_store %arg5[%c0_11, %c0_12], %12 {strides = array<i32>} : memref<8x128xf32, #tpu.memory_space<vmem>>, vector<8x128xf32>,
    } else {
    }
    %c0 = arith.constant 0 : index
    %c0_1 = arith.constant 0 : index
    %3 = vector.load %arg5[%c0, %c0_1] : memref<8x128xf32, #tpu.memory_space<vmem>>, vector<8x128xf32>
    %c0_2 = arith.constant 0 : index
    %c0_3 = arith.constant 0 : index
    %4 = vector.load %arg2[%c0_2, %c0_3] : memref<8x128xbf16, #tpu.memory_space<vmem>>, vector<8x128xbf16>
    %c0_4 = arith.constant 0 : index
    %c0_5 = arith.constant 0 : index
    %5 = vector.load %arg3[%c0_4, %c0_5] : memref<128x128xbf16, #tpu.memory_space<vmem>>, vector<128x128xbf16>
    %cst = arith.constant dense<0.000000e+00> : vector<8x128xf32>
    %6 = tpu.matmul %4, %5, %cst {dimension_numbers = #tpu.dot_dimension_numbers<[1], [0], [0], [1], [0, 0, 1, 1], [], []>} : vector<8x128xbf16>, vector<128x128xbf16>, vector<8x128xf32> -> vector<8x128xf32>
    %7 = arith.addf %3, %6 : vector<8x128xf32>
    %c0_6 = arith.constant 0 : index
    %c0_7 = arith.constant 0 : index
    %8 = vector.load %arg5[%c0_6, %c0_7] : memref<8x128xf32, #tpu.memory_space<vmem>>, vector<8x128xf32>
    tpu.vector_store %arg5[%c0_6, %c0_7], %7 {strides = array<i32>} : memref<8x128xf32, #tpu.memory_space<vmem>>, vector<8x128xf32>,
    %c0_i32_8 = arith.constant 0 : i32
    %9 = arith.cmpi eq, %arg1, %c0_i32_8 : i32
    %10 = arith.extui %9 : i1 to i32
    %c0_i32_9 = arith.constant 0 : i32
    %11 = arith.cmpi ne, %10, %c0_i32_9 : i32
    scf.if %11 {
      %c0_10 = arith.constant 0 : index
      %c0_11 = arith.constant 0 : index
      %12 = vector.load %arg5[%c0_10, %c0_11] : memref<8x128xf32, #tpu.memory_space<vmem>>, vector<8x128xf32>
      %c0_12 = arith.constant 0 : index
      %c0_13 = arith.constant 0 : index
      %13 = vector.load %arg4[%c0_12, %c0_13] : memref<1x128xf32, #tpu.memory_space<vmem>>, vector<1x128xf32>
      %14 = vector.broadcast %13 : vector<1x128xf32> to vector<8x128xf32>
      %15 = arith.addf %12, %14 : vector<8x128xf32>
      %16 = arith.negf %15 : vector<8x128xf32>
      %17 = math.exp %16 : vector<8x128xf32>
      %cst_14 = arith.constant 1.000000e+00 : f32
      %18 = vector.broadcast %cst_14 : f32 to vector<8x128xf32>
      %19 = arith.addf %18, %17 : vector<8x128xf32>
      %20 = arith.divf %18, %19 : vector<8x128xf32>
      %c0_15 = arith.constant 0 : index
      %c0_16 = arith.constant 0 : index
      %21 = vector.load %arg5[%c0_15, %c0_16] : memref<8x128xf32, #tpu.memory_space<vmem>>, vector<8x128xf32>
      tpu.vector_store %arg5[%c0_15, %c0_16], %20 {strides = array<i32>} : memref<8x128xf32, #tpu.memory_space<vmem>>, vector<8x128xf32>,
    } else {
    }
    return
  }
  func.func @transform_0(%arg0: i32, %arg1: i32) -> (i32, i32) {
    %c0_i32 = arith.constant 0 : i32
    return %arg0, %arg1 : i32, i32
  }
  func.func @transform_1(%arg0: i32, %arg1: i32) -> (i32, i32) {
    %c0_i32 = arith.constant 0 : i32
    %c0_i32_0 = arith.constant 0 : i32
    return %arg1, %c0_i32 : i32, i32
  }
  func.func @transform_2(%arg0: i32, %arg1: i32) -> (i32, i32) {
    %c0_i32 = arith.constant 0 : i32
    %c0_i32_0 = arith.constant 0 : i32
    %c0_i32_1 = arith.constant 0 : i32
    return %c0_i32, %c0_i32_0 : i32, i32
  }
  func.func @transform_3(%arg0: i32, %arg1: i32) -> (i32, i32) {
    %c0_i32 = arith.constant 0 : i32
    %c0_i32_0 = arith.constant 0 : i32
    return %arg0, %c0_i32 : i32, i32
  }
}

</mosaic_0001>

<bundles_post_ra>
// kernel: bow_classifier.1
= control target key start
LH: loop header
LB: loop body
LE: loop exit
PB: predicated region body
PF: predicated region fallthrough
CT: control target
= control target key end

     0   :  { %8 = vsyncpa [#allocation3], 0  ;;  %s244_s12 = smov [#allocation2]   ;;  %s281_s0 = inlined_call_operand.vmem [shape: bf16[8,128], index: 0, kind: input, shape index: {}]   ;;  %s282_s1 = inlined_call_operand.hbm [shape: bf16[128,128], index: 1, kind: input, shape index: {}]   ;;  %s283_s2 = inlined_call_operand.vmem [shape: f32[1,128], index: 2, kind: input, shape index: {}]   ;;  %s284_s3 = inlined_call_operand.vmem [shape: f32[8,128], index: 3, kind: output, shape index: {}]  }
   0x1   :  { %s16_s13 = sshll.u32 %s244_s12, 4  ;;  %s17_s13 = int_to_ptr.vmem [resolvable:$true] %s16_s13 }
   0x2   :  { %s230_s14 = scalar_lea.vmem %s17_s13, 1024  ;;  %p235_p1 = scmp.lt.s32.totalorder %s17_s13, %s17_s13 }
   0x3   :  { %p231_p0 = scmp.ne.s32.totalorder %s17_s13, %s230_s14  ;;  %p236_p2 = scmp.lt.s32.totalorder %s230_s14, %s230_s14 }
   0x5   :  { %p237_p3 = por %p236_p2, %p235_p1 }
   0x7   :  { %p238_p4 = pnand %p237_p3, %p231_p0 }
   0x9   :  { %241 = shalt.err (!%p238_p4)
}
   0xa   :  { %s245_s15 = smov 64   ;;  %s246_s16 = smov 4  }
   0xb   :  { %22 = dma.hbm_to_vmem [thread:$0]  %s282_s1, 1024, %s17_s13, [#allocation3], %s245_s15, %s245_s15, %s246_s16  }
   0xc   :  { %242 = dma.done.wait [#allocation3], 1024  }
   0xd   :  { %243 = vsyncadd [#allocation3], 4294966272  ;;  %v247_v0 = vmov 0.0   ;;  %vm248_vm0 = vmmov 0   ;;  %v210_v1 = vld [vmem:[#allocation2 + $0x38] sm:$0xff]   ;;  %v211_v2 = vld [vmem:[#allocation2 + $0x30] sm:$0xff]  }
   0xe   :  { %185 = vmatprep.subr.bf16.mxu0 %v247_v0  ;;  %201 = vmatprep.mubr.msk.bf16.mxu0 %vm248_vm0, %v247_v0  ;;  %v212_v3 = vld [vmem:[#allocation2 + $0x28] sm:$0xff]   ;;  %v213_v4 = vld [vmem:[#allocation2 + $0x20] sm:$0xff]   ;;  %v214_v5 = vld [vmem:[#allocation2 + $0x18] sm:$0xff]  }
   0xf   :  { %186 = vmatpush3.bf16.msra.mxu0 %v210_v1  ;;  %v215_v6 = vld [vmem:[#allocation2 + $0x10] sm:$0xff]   ;;  %v216_v7 = vld [vmem:[#allocation2 + $0x8] sm:$0xff]   ;;  %v217_v8 = vld [vmem:[#allocation2] sm:$0xff]  }
  0x10   :  { %187 = vmatprep.subr.bf16.mxu0 %v247_v0  ;;  %v35_v9 = vld [vmem:[%s281_s0] sm:$0xf] }
  0x11   :  { %v174_v11 = vld [vmem:[%s283_s2] ss:$0 sm:$0xff] }
  0x13   :  { %188 = vmatpush3.bf16.msra.mxu0 %v211_v2 }
  0x14   :  { %189 = vmatprep.subr.bf16.mxu0 %v247_v0 }
  0x17   :  { %190 = vmatpush3.bf16.msra.mxu0 %v212_v3 }
  0x18   :  { %191 = vmatprep.subr.bf16.mxu0 %v247_v0 }
  0x1b   :  { %192 = vmatpush3.bf16.msra.mxu0 %v213_v4 }
  0x1c   :  { %193 = vmatprep.subr.bf16.mxu0 %v247_v0 }
  0x1f   :  { %194 = vmatpush3.bf16.msra.mxu0 %v214_v5 }
  0x20   :  { %195 = vmatprep.subr.bf16.mxu0 %v247_v0 }
  0x23   :  { %196 = vmatpush3.bf16.msra.mxu0 %v215_v6 }
  0x24   :  { %197 = vmatprep.subr.bf16.mxu0 %v247_v0 }
  0x27   :  { %198 = vmatpush3.bf16.msra.mxu0 %v216_v7 }
  0x28   :  { %199 = vmatprep.subr.bf16.mxu0 %v247_v0 }
  0x2b   :  { %200 = vmatpush3.bf16.msra.mxu0 %v217_v8 }
  0x2e   :  { %202 = vmatmul.mubr.bf16.vlgmr.msra.gmra.mxu0 %v35_v9 }
  0xee   :  { %v134_v10 = vpop.f32.mrf.mxu0 }
  0xef   :  { %v153_v13 = vadd.f32 %v174_v11, %v134_v10 }
  0xf0   :  { %v203_v12 = vpop.f32.mrf.mxu0 }
  0xf1   :  { %v175_v15 = vmul.f32 -1.442695, %v153_v13 }
  0xf2   :  { %v137_v14 = vpop.f32.mrf.mxu0 }
  0xf3   :  { %218 = vpow2.f32 %v175_v15 }
  0xf4   :  { %v204_v16 = vpop.f32.mrf.mxu0 }
 0x100   :  { %v219_v17 = vpop.eup %218 }
 0x101   :  { %v157_v18 = vadd.f32 1.0, %v219_v17 }
 0x103   :  { %220 = vrcp.f32 %v157_v18 }
 0x110   :  { %v221_v19 = vpop.eup %220 }
 0x111   :  { %160 = vst [vmem:[%s284_s3] sm:$0xff] %v221_v19 }
 0x112   :  { %165 = vsyncpa [#allocation3], 1 }

</bundles_post_ra>
